<compile_context>
chip_gen: v5e
topology: v5e:2x2
jax: 0.10.0
libtpu: 0.0.40
codegen_flags: <defaults>
</compile_context>

<pallas_src>
import functools

import jax
import jax.numpy as jnp
from jax.experimental import pallas as pl
from jax.experimental.pallas import tpu as pltpu


def _round_up(x, m):
    return ((x + m - 1) // m) * m


def avg_channel_attention_kernel(x_ref, wt_ref, b_ref, o_ref, acc_ref, *, inv_hw):
    # x_ref:  (TB, C, HW_TILE)  slab of flattened NCHW input
    # wt_ref: (C, C)            conv weight transposed (C_in, C_out)
    # b_ref:  (1, C)            conv bias
    # o_ref:  (TB, C)           channel-attention logits for this batch tile
    # acc_ref:(TB, C) f32       running spatial sums, resident across the hw axis
    h = pl.program_id(1)

    @pl.when(h == 0)
    def _init():
        acc_ref[...] = jnp.zeros_like(acc_ref)

    # Partial adaptive average pool: accumulate spatial sums in float32.
    acc_ref[...] += jnp.sum(x_ref[...].astype(jnp.float32), axis=-1)

    @pl.when(h == pl.num_programs(1) - 1)
    def _finalize():
        pooled = acc_ref[...] * inv_hw                           # (TB, C) fp32 means
        out = jnp.dot(pooled, wt_ref[...].astype(jnp.float32),
                      preferred_element_type=jnp.float32)        # 1x1 conv == matmul
        out = out + b_ref[...].astype(jnp.float32)
        o_ref[...] = out.astype(o_ref.dtype)


def avg_channel_attention_2d(x, weight, bias, *, x_tile_budget_bytes=4 << 20):
    """x: (B, C, H, W), weight: (C, C, 1, 1), bias: (C,) -> (B, C, 1, 1)."""
    B, C, H, W = x.shape
    HW = H * W
    itemsize = jnp.dtype(x.dtype).itemsize

    # ---- tile selection --------------------------------------------------
    # Batch tile: at least 8 rows (f32 sublane density), at most 128 (MXU M dim).
    TB = min(128, _round_up(B, 8))
    # Spatial tile: a multiple of 128 lanes that keeps one (TB, C, HW_TILE)
    # buffer under the budget (x2 pipeline buffers counted below); if the full
    # feature map already fits, take it whole (no remainder handling needed).
    max_lanes = max(128, x_tile_budget_bytes // (TB * C * itemsize))
    if HW <= max_lanes:
        hw_tile = HW
    else:
        hw_tile = (max_lanes // 128) * 128

    B_pad = _round_up(B, TB)
    HW_pad = _round_up(HW, hw_tile)

    # ---- layout plumbing ---------------------------------------------------
    x_flat = x.reshape(B, C, HW)
    if B_pad != B or HW_pad != HW:
        # Zero padding: padded rows produce (dropped) bias-only outputs and
        # padded lanes contribute nothing to the spatial sum.
        x_flat = jnp.pad(x_flat, ((0, B_pad - B), (0, 0), (0, HW_pad - HW)))

    wt = weight.reshape(C, C).T      # (C_in, C_out): kernel computes pooled @ W^T
    b2d = bias.reshape(1, C)

    grid = (B_pad // TB, HW_pad // hw_tile)

    # ---- VMEM budget / scheduler hints -------------------------------------
    vmem_bytes = (2 * TB * C * hw_tile * itemsize                 # x double buffer
                  + 2 * C * C * jnp.dtype(wt.dtype).itemsize      # weight buffers
                  + 2 * C * jnp.dtype(b2d.dtype).itemsize         # bias buffers
                  + 2 * TB * C * itemsize                         # output buffers
                  + TB * C * 4)                                   # f32 accumulator
    vmem_limit = int(min(max(2 * vmem_bytes + (4 << 20), 32 << 20), 100 << 20))

    kernel = functools.partial(avg_channel_attention_kernel, inv_hw=1.0 / HW)

    out = pl.pallas_call(
        kernel,
        out_shape=jax.ShapeDtypeStruct((B_pad, C), x.dtype),
        grid=grid,
        in_specs=[
            pl.BlockSpec((TB, C, hw_tile), lambda b, h: (b, 0, h)),
            pl.BlockSpec((C, C), lambda b, h: (0, 0)),
            pl.BlockSpec((1, C), lambda b, h: (0, 0)),
        ],
        out_specs=pl.BlockSpec((TB, C), lambda b, h: (b, 0)),
        scratch_shapes=[pltpu.VMEM((TB, C), jnp.float32)],
        compiler_params=pltpu.CompilerParams(
            dimension_semantics=("parallel", "arbitrary"),
            vmem_limit_bytes=vmem_limit,
        ),
        cost_estimate=pl.CostEstimate(
            flops=2 * B * C * C + B * C * HW,
            transcendentals=0,
            bytes_accessed=(B * C * HW + C * C + C + B * C) * itemsize,
        ),
    )(x_flat, wt, b2d)

    return out[:B].reshape(B, C, 1, 1)


if __name__ == "__main__":
    B, C, H, W = 2, 4, 16, 16

    key = jax.random.PRNGKey(0)
    kx, kw, kb = jax.random.split(key, 3)

    x = jax.random.normal(kx, (B, C, H, W), dtype=jnp.float32)
    # Shapes match nn.Conv2d(C, C, kernel_size=1, bias=True).
    weight = jax.random.normal(kw, (C, C, 1, 1), dtype=jnp.float32) * 0.1
    bias = jax.random.normal(kb, (C,), dtype=jnp.float32) * 0.1

    out = avg_channel_attention_2d(x, weight, bias)
    out = jax.block_until_ready(out)

    # Plain-JAX reference for a sanity check of the kernel semantics.
    avg_ref = jnp.mean(x, axis=(2, 3))                            # (B, C)
    ref = (avg_ref @ weight.reshape(C, C).T + bias[None, :]).reshape(B, C, 1, 1)

    assert out.shape == (B, C, 1, 1)
    assert jnp.allclose(out, ref, atol=1e-5, rtol=1e-5)

    print("KERNEL_OK")
</pallas_src>

<mosaic_0001>
module attributes {stable_mosaic.version = 11 : i64} {
  func.func @avg_channel_attention_kernel(%arg0: i32, %arg1: i32, %arg2: memref<8x4x256xf32, #tpu.memory_space<vmem>>, %arg3: memref<4x4xf32, #tpu.memory_space<vmem>>, %arg4: memref<1x4xf32, #tpu.memory_space<vmem>>, %arg5: memref<8x4xf32, #tpu.memory_space<vmem>>, %arg6: memref<8x4xf32, #tpu.memory_space<vmem>>) attributes {dimension_semantics = [#tpu.dimension_semantics<parallel>, #tpu.dimension_semantics<arbitrary>], iteration_bounds = array<i64: 1, 1>, scalar_prefetch = 0 : i64, scratch_operands = 1 : i64, tpu.core_type = #tpu.core_type<tc>, window_params = [{transform_indices = @transform_0, window_bounds = array<i64: 8, 4, 256>}, {pipeline_mode = #tpu.pipeline_mode<synchronous>, transform_indices = @transform_1, window_bounds = array<i64: 4, 4>}, {pipeline_mode = #tpu.pipeline_mode<synchronous>, transform_indices = @transform_2, window_bounds = array<i64: 1, 4>}, {transform_indices = @transform_3, window_bounds = array<i64: 8, 4>}]} {
    %c0_i32 = arith.constant 0 : i32
    %0 = arith.cmpi eq, %arg1, %c0_i32 : i32
    %1 = arith.extui %0 : i1 to i32
    %c0_i32_0 = arith.constant 0 : i32
    %2 = arith.cmpi ne, %1, %c0_i32_0 : i32
    scf.if %2 {
      %cst_9 = arith.constant 0.000000e+00 : f32
      %11 = vector.broadcast %cst_9 : f32 to vector<8x4xf32>
      %c0_10 = arith.constant 0 : index
      %c0_11 = arith.constant 0 : index
      %12 = vector.load %arg6[%c0_10, %c0_11] : memref<8x4xf32, #tpu.memory_space<vmem>>, vector<8x4xf32>
      tpu.vector_store %arg6[%c0_10, %c0_11], %11 {strides = array<i32>} : memref<8x4xf32, #tpu.memory_space<vmem>>, vector<8x4xf32>,
    } else {
    }
    %c0 = arith.constant 0 : index
    %c0_1 = arith.constant 0 : index
    %3 = vector.load %arg6[%c0, %c0_1] : memref<8x4xf32, #tpu.memory_space<vmem>>, vector<8x4xf32>
    %c0_2 = arith.constant 0 : index
    %c0_3 = arith.constant 0 : index
    %c0_4 = arith.constant 0 : index
    %4 = vector.load %arg2[%c0_2, %c0_3, %c0_4] : memref<8x4x256xf32, #tpu.memory_space<vmem>>, vector<8x4x256xf32>
    %cst = arith.constant dense<0.000000e+00> : vector<8x4xf32>
    %5 = vector.multi_reduction <add>, %4, %cst [2] : vector<8x4x256xf32> to vector<8x4xf32>
    %6 = arith.addf %3, %5 : vector<8x4xf32>
    %c0_5 = arith.constant 0 : index
    %c0_6 = arith.constant 0 : index
    %7 = vector.load %arg6[%c0_5, %c0_6] : memref<8x4xf32, #tpu.memory_space<vmem>>, vector<8x4xf32>
    tpu.vector_store %arg6[%c0_5, %c0_6], %6 {strides = array<i32>} : memref<8x4xf32, #tpu.memory_space<vmem>>, vector<8x4xf32>,
    %c0_i32_7 = arith.constant 0 : i32
    %8 = arith.cmpi eq, %arg1, %c0_i32_7 : i32
    %9 = arith.extui %8 : i1 to i32
    %c0_i32_8 = arith.constant 0 : i32
    %10 = arith.cmpi ne, %9, %c0_i32_8 : i32
    scf.if %10 {
      %c0_9 = arith.constant 0 : index
      %c0_10 = arith.constant 0 : index
      %11 = vector.load %arg6[%c0_9, %c0_10] : memref<8x4xf32, #tpu.memory_space<vmem>>, vector<8x4xf32>
      %cst_11 = arith.constant 3.906250e-03 : f32
      %12 = vector.broadcast %cst_11 : f32 to vector<8x4xf32>
      %13 = arith.mulf %11, %12 : vector<8x4xf32>
      %c0_12 = arith.constant 0 : index
      %c0_13 = arith.constant 0 : index
      %14 = vector.load %arg3[%c0_12, %c0_13] : memref<4x4xf32, #tpu.memory_space<vmem>>, vector<4x4xf32>
      %cst_14 = arith.constant dense<0.000000e+00> : vector<8x4xf32>
      %15 = tpu.matmul %13, %14, %cst_14 {dimension_numbers = #tpu.dot_dimension_numbers<[1], [0], [0], [1], [0, 0, 1, 1], [], []>} : vector<8x4xf32>, vector<4x4xf32>, vector<8x4xf32> -> vector<8x4xf32>
      %c0_15 = arith.constant 0 : index
      %c0_16 = arith.constant 0 : index
      %16 = vector.load %arg4[%c0_15, %c0_16] : memref<1x4xf32, #tpu.memory_space<vmem>>, vector<1x4xf32>
      %17 = vector.broadcast %16 : vector<1x4xf32> to vector<8x4xf32>
      %18 = arith.addf %15, %17 : vector<8x4xf32>
      %c0_17 = arith.constant 0 : index
      %c0_18 = arith.constant 0 : index
      %19 = vector.load %arg5[%c0_17, %c0_18] : memref<8x4xf32, #tpu.memory_space<vmem>>, vector<8x4xf32>
      tpu.vector_store %arg5[%c0_17, %c0_18], %18 {strides = array<i32>} : memref<8x4xf32, #tpu.memory_space<vmem>>, vector<8x4xf32>,
    } else {
    }
    return
  }
  func.func @transform_0(%arg0: i32, %arg1: i32) -> (i32, i32, i32) {
    %c0_i32 = arith.constant 0 : i32
    %c0_i32_0 = arith.constant 0 : i32
    return %arg0, %c0_i32, %arg1 : i32, i32, i32
  }
  func.func @transform_1(%arg0: i32, %arg1: i32) -> (i32, i32) {
    %c0_i32 = arith.constant 0 : i32
    %c0_i32_0 = arith.constant 0 : i32
    %c0_i32_1 = arith.constant 0 : i32
    return %c0_i32, %c0_i32_0 : i32, i32
  }
  func.func @transform_2(%arg0: i32, %arg1: i32) -> (i32, i32) {
    %c0_i32 = arith.constant 0 : i32
    %c0_i32_0 = arith.constant 0 : i32
    %c0_i32_1 = arith.constant 0 : i32
    return %c0_i32, %c0_i32_0 : i32, i32
  }
  func.func @transform_3(%arg0: i32, %arg1: i32) -> (i32, i32) {
    %c0_i32 = arith.constant 0 : i32
    %c0_i32_0 = arith.constant 0 : i32
    return %arg0, %c0_i32 : i32, i32
  }
}

</mosaic_0001>

<bundles_post_ra>
// kernel: tpu_custom_call.1
= control target key start
LH: loop header
LB: loop body
LE: loop exit
PB: predicated region body
PF: predicated region fallthrough
CT: control target
= control target key end

     0   :  { %8 = vsyncpa [#allocation4], 0  ;;  %s348_s0 = inlined_call_operand.hbm [shape: f32[8,4,256], index: 0, kind: input, shape index: {}]   ;;  %s349_s1 = inlined_call_operand.hbm [shape: f32[4,4], index: 1, kind: input, shape index: {}]   ;;  %s350_s2 = inlined_call_operand.vmem [shape: f32[1,4], index: 2, kind: input, shape index: {}]   ;;  %s351_s3 = inlined_call_operand.vmem [shape: f32[8,4], index: 3, kind: output, shape index: {}]  }
   0x1   :  { %s14_s14 = sshll.u32 %s348_s0, 4  ;;  %s15_s14 = int_to_ptr.hbm [resolvable:$true] %s14_s14 }
   0x2   :  { %9 = vsyncpa [#allocation6], 0  ;;  %s290_s15 = smov [#allocation3]   ;;  %s28_s19 = sshll.u32 %s349_s1, 4  ;;  %s29_s19 = int_to_ptr.hbm [resolvable:$true] %s28_s19 }
   0x3   :  { %s16_s16 = sshll.u32 %s290_s15, 4  ;;  %s291_s20 = smov 128   ;;  %s17_s16 = int_to_ptr.vmem [resolvable:$true] %s16_s16 }
   0x4   :  { %s292_s21 = smov 8   ;;  %s293_s22 = smov [#allocation5]  }
   0x5   :  { %22 = dma.hbm_to_vmem [thread:$0]  %s15_s14, 1024, %s17_s16, [#allocation4], %s291_s20, %s291_s20, %s292_s21  }
   0x6   :  { %s30_s23 = sshll.u32 %s293_s22, 4  ;;  %s31_s23 = int_to_ptr.vmem [resolvable:$true] %s30_s23 }
   0x7   :  { %33 = dma.hbm_to_vmem [thread:$0]  %s29_s19, 64, %s31_s23, [#allocation6]  }
   0x8   :  { %286 = dma.done.wait [#allocation4], 1024  }
   0x9   :  { %287 = vsyncadd [#allocation4], 4294966272 }
   0xa   :  { %288 = dma.done.wait [#allocation6], 64  }
   0xb   :  { %289 = vsyncadd [#allocation6], 4294967232  ;;  %v51_v0 = vld [vmem:[#allocation3] sm:$0xff]  ;;  %v53_v1 = vld [vmem:[#allocation3 + $0x10] sm:$0xff]  ;;  %vm110_vm0 = vcmask 1043456   ;;  %vm48_vm1 = vcmask 31744   ;;  %v159_v51 = vlaneseq }
   0xc   :  { %67 = vst [vmem:[#allocation1] ss:$2 sm:$0xff] %v51_v0  ;;  %v52_v2 = vld [vmem:[#allocation3 + $0x8] sm:$0xff]  ;;  %v54_v3 = vld [vmem:[#allocation3 + $0x18] sm:$0xff]  ;;  %v55_v4 = vld [vmem:[#allocation3 + $0x20] sm:$0xff]  ;;  %v294_v48 = vmov 0.0  }
   0xd   :  { %75 = vst [vmem:[#allocation1 + $0x20] ss:$2 sm:$0xff] %v53_v1  ;;  %v57_v5 = vld [vmem:[#allocation3 + $0x30] sm:$0xff]  ;;  %v56_v10 = vld [vmem:[#allocation3 + $0x28] sm:$0xff]  ;;  %v58_v16 = vld [vmem:[#allocation3 + $0x38] sm:$0xff]  ;;  %v160_v53 = vand.u32 127, %v159_v51 }
   0xe   :  { %71 = vst [vmem:[#allocation1 + $0x10] ss:$2 sm:$0xff] %v52_v2  ;;  %v192_v49 = vld [vmem:[#allocation5] sm:$0xf]  ;;  %vm169_vm2 = vcmask 1041409   ;;  %vm171_vm3 = vcmask 1042434  }
   0xf   :  { %79 = vst [vmem:[#allocation1 + $0x30] ss:$2 sm:$0xff] %v54_v3  ;;  %230 = vmatpush.msk.msra.mxu0 %vm110_vm0, %v192_v49  ;;  %vm173_vm4 = vcmask 1043459   ;;  %vm175_vm5 = vcmask 1044484   ;;  %vm177_vm6 = vcmask 1045509   ;;  %vm179_vm7 = vcmask 1046534  }
  0x10   :  { %49 = vst.msk [vmem:[#allocation2] sm:$0xff] %vm48_vm1, %v294_v48  ;;  %vm181_vm8 = vcmask 1047559  }
  0x13   :  { %v68_v6 = vld.sshfl [vmem:[#allocation1] sm:$0xff pattern:$0x75316420]  ;;  %v69_v7 = vld.sshfl [vmem:[#allocation1 + $0x8] sm:$0xff pattern:$0x75316420] }
  0x14   :  { %v111_v8 = vsel %vm110_vm0, %v68_v6, 0.0  ;;  %v112_v9 = vsel %vm110_vm0, %v69_v7, 0.0  ;;  %82 = vst [vmem:[#allocation1] ss:$2 sm:$0xff] %v55_v4 }
  0x15   :  { %v113_v11 = vadd.f32 %v112_v9, %v111_v8  ;;  %v76_v12 = vld.sshfl [vmem:[#allocation1 + $0x20] sm:$0xff pattern:$0x75316420]  ;;  %v77_v13 = vld.sshfl [vmem:[#allocation1 + $0x28] sm:$0xff pattern:$0x75316420] }
  0x16   :  { %v121_v14 = vsel %vm110_vm0, %v76_v12, 0.0  ;;  %v122_v15 = vsel %vm110_vm0, %v77_v13, 0.0  ;;  %88 = vst [vmem:[#allocation1 + $0x20] ss:$2 sm:$0xff] %v57_v5 }
  0x17   :  { %114 = vadd.xlane.f32.xlu0 %v113_v11  ;;  %v123_v17 = vadd.f32 %v122_v15, %v121_v14  ;;  %v72_v18 = vld.sshfl [vmem:[#allocation1 + $0x10] sm:$0xff pattern:$0x75316420]  ;;  %v73_v19 = vld.sshfl [vmem:[#allocation1 + $0x18] sm:$0xff pattern:$0x75316420] }
  0x18   :  { %85 = vst [vmem:[#allocation1 + $0x10] ss:$2 sm:$0xff] %v56_v10  ;;  %v116_v20 = vsel %vm110_vm0, %v72_v18, 0.0  ;;  %v117_v21 = vsel %vm110_vm0, %v73_v19, 0.0  ;;  %v50_v9 = vld [vmem:[#allocation2] sm:$0xff] }
  0x19   :  { %124 = vadd.xlane.f32.xlu1 %v123_v17  ;;  %v80_v22 = vld.sshfl [vmem:[#allocation1 + $0x30] sm:$0xff pattern:$0x75316420]  ;;  %v81_v23 = vld.sshfl [vmem:[#allocation1 + $0x38] sm:$0xff pattern:$0x75316420]  ;;  %v118_v26 = vadd.f32 %v117_v21, %v116_v20 }
  0x1a   :  { %91 = vst [vmem:[#allocation1 + $0x30] ss:$2 sm:$0xff] %v58_v16  ;;  %v126_v24 = vsel %vm110_vm0, %v80_v22, 0.0  ;;  %v127_v25 = vsel %vm110_vm0, %v81_v23, 0.0  ;;  %v237_v15 = vld [vmem:[%s350_s2] ss:$0 sm:$0xff] }
  0x1b   :  { %v83_v27 = vld.sshfl [vmem:[#allocation1] sm:$0xff pattern:$0x75316420]  ;;  %v84_v28 = vld.sshfl [vmem:[#allocation1 + $0x8] sm:$0xff pattern:$0x75316420]  ;;  %v128_v32 = vadd.f32 %v127_v25, %v126_v24 }
  0x1c   :  { %v131_v29 = vsel %vm110_vm0, %v83_v27, 0.0  ;;  %v132_v30 = vsel %vm110_vm0, %v84_v28, 0.0 }
  0x1d   :  { %v133_v31 = vadd.f32 %v132_v30, %v131_v29  ;;  %v89_v33 = vld.sshfl [vmem:[#allocation1 + $0x20] sm:$0xff pattern:$0x75316420]  ;;  %v90_v34 = vld.sshfl [vmem:[#allocation1 + $0x28] sm:$0xff pattern:$0x75316420] }
  0x1e   :  { %v141_v39 = vsel %vm110_vm0, %v89_v33, 0.0  ;;  %v142_v40 = vsel %vm110_vm0, %v90_v34, 0.0 }
  0x1f   :  { %119 = vadd.xlane.f32.xlu0 %v118_v26  ;;  %134 = vadd.xlane.f32.xlu2 %v133_v31  ;;  %v86_v35 = vld.sshfl [vmem:[#allocation1 + $0x10] sm:$0xff pattern:$0x75316420]  ;;  %v87_v36 = vld.sshfl [vmem:[#allocation1 + $0x18] sm:$0xff pattern:$0x75316420]  ;;  %v143_v46 = vadd.f32 %v142_v40, %v141_v39 }
  0x20   :  { %v136_v37 = vsel %vm110_vm0, %v86_v35, 0.0  ;;  %v137_v38 = vsel %vm110_vm0, %v87_v36, 0.0 }
  0x21   :  { %129 = vadd.xlane.f32.xlu1 %v128_v32  ;;  %v92_v41 = vld.sshfl [vmem:[#allocation1 + $0x30] sm:$0xff pattern:$0x75316420]  ;;  %v93_v42 = vld.sshfl [vmem:[#allocation1 + $0x38] sm:$0xff pattern:$0x75316420]  ;;  %v138_v45 = vadd.f32 %v137_v38, %v136_v37 }
  0x22   :  { %v146_v43 = vsel %vm110_vm0, %v92_v41, 0.0  ;;  %v147_v44 = vsel %vm110_vm0, %v93_v42, 0.0 }
  0x23   :  { %v148_v47 = vadd.f32 %v147_v44, %v146_v43 }
  0x27   :  { %139 = vadd.xlane.f32.xlu2 %v138_v45  ;;  %144 = vadd.xlane.f32.xlu0 %v143_v46 }
  0x29   :  { %149 = vadd.xlane.f32.xlu1 %v148_v47 }
  0x8a   :  { %v115_v50 = vpop.xlane.xlu0 %114 }
  0x8b   :  { %v161_v56 = vperm.slane %v115_v50, %v160_v53 }
  0x8c   :  { %v125_v52 = vpop.xlane.xlu1 %124 }
  0x8d   :  { %v163_v58 = vperm.slane %v125_v52, %v160_v53 }
  0x92   :  { %v120_v54 = vpop.xlane.xlu0 %119  ;;  %v135_v55 = vpop.xlane.xlu2 %134 }
  0x93   :  { %v162_v57 = vperm.slane %v120_v54, %v160_v53  ;;  %v165_v0 = vperm.slane %v135_v55, %v160_v53 }
  0x94   :  { %v130_v59 = vpop.xlane.xlu1 %129 }
  0x95   :  { %v170_v60 = vsel %vm169_vm2, %v162_v57, %v161_v56  ;;  %v164_v61 = vperm.slane %v130_v59, %v160_v53 }
  0x96   :  { %v172_v62 = vsel %vm171_vm3, %v163_v58, %v170_v60 }
  0x97   :  { %v174_v63 = vsel %vm173_vm4, %v164_v61, %v172_v62 }
  0x98   :  { %v176_v5 = vsel %vm175_vm5, %v165_v0, %v174_v63 }
  0x9a   :  { %v140_v1 = vpop.xlane.xlu2 %139  ;;  %v145_v2 = vpop.xlane.xlu0 %144 }
  0x9b   :  { %v166_v3 = vperm.slane %v140_v1, %v160_v53  ;;  %v167_v4 = vperm.slane %v145_v2, %v160_v53 }
  0x9c   :  { %v150_v6 = vpop.xlane.xlu1 %149 }
  0x9d   :  { %v178_v7 = vsel %vm177_vm6, %v166_v3, %v176_v5  ;;  %v168_v8 = vperm.slane %v150_v6, %v160_v53 }
  0x9e   :  { %v180_v10 = vsel %vm179_vm7, %v167_v4, %v178_v7 }
  0x9f   :  { %v182_v11 = vsel %vm181_vm8, %v168_v8, %v180_v10 }
  0xa0   :  { %v184_v12 = vadd.f32 %v182_v11, %v50_v9 }
  0xa2   :  { %186 = vst.msk [vmem:[#allocation2] sm:$0xff] %vm48_vm1, %v184_v12 }
  0xa9   :  { %v190_v13 = vld [vmem:[#allocation2] sm:$0xff] }
  0xaa   :  { %v191_v14 = vmul.f32 0.00390625, %v190_v13 }
  0xac   :  { %231 = vmatmul.msk.f32.vlgmr.msra.gmra.mxu0 %vm48_vm1, %v191_v14 }
 0x129   :  { %v220_v16 = vpop.f32.mrf.mxu0 }
 0x12a   :  { %v221_v17 = vadd.f32 %v237_v15, %v220_v16 }
 0x12c   :  { %223 = vst.msk [vmem:[%s351_s3] sm:$0xff] %vm48_vm1, %v221_v17 }
 0x12d   :  { %228 = vsyncpa [#allocation4], 1 }
 0x12e   :  { %229 = vsyncpa [#allocation6], 1 }

</bundles_post_ra>
